<compile_context>
chip_gen: v6e
topology: v6e:2x2x1
jax: 0.10.0
libtpu: 0.0.40
codegen_flags: <defaults>
</compile_context>

<pallas_src>
import functools

import jax
import jax.numpy as jnp
from jax import lax
from jax.experimental import pallas as pl
from jax.experimental.pallas import tpu as pltpu


_ROW_TILE_MAX = 1024                     # rows; 512-1024 already saturates HBM BW
_BLOCK_BYTES_TARGET = 4 * 1024 * 1024    # per (tn, S) block for the streaming passes
_VMEM_LIMIT_BYTES = 32 * 1024 * 1024     # safe on v5e/v6e (128 MiB) and v7x (64 MiB physical)
_FUSED_BYTES_MAX = 4 * 1024 * 1024       # whole-x-in-VMEM single-kernel threshold
_FUSED_CW_MAX = 256                      # keep kron-expanded weights <= 256 KiB each


def _gauss_projection(y):
    """GaussProjection with global mean / unbiased std (matches torch)."""
    n = y.size
    mean = jnp.sum(y) / n
    var = jnp.sum((y - mean) ** 2) / max(n - 1, 1)   # torch.std(): unbiased (N-1)
    std = jnp.sqrt(var)
    sigma = jnp.sqrt(2.0 * jnp.pi) * std
    # NOTE: std == 0 -> inf/nan, identical to the PyTorch module's behavior.
    return jnp.exp(-(y - mean) ** 2 / (2.0 * var)) / sigma


# ---------------------------------------------------------------------------
# Fast path: whole x fits comfortably in VMEM -> single fused kernel.
# ---------------------------------------------------------------------------
def _fused_kernel(batch, cw, x_ref, w1e_ref, b1e_ref, w2e_ref, b2e_ref, o_ref):
    # x_ref: (N, S), N = batch * cw.  Weights are Kronecker-expanded so the
    # per-batch SE math runs directly on (cw, 1) column vectors -- the same row
    # layout as x, so no in-kernel reshape / transpose is needed.
    x = x_ref[...].astype(jnp.float32)
    pooled = jnp.mean(x, axis=-1, keepdims=True)                  # (N, 1)
    w1e, b1e = w1e_ref[...], b1e_ref[...]
    w2e, b2e = w2e_ref[...], b2e_ref[...]
    ys = []
    for b in range(batch):                                        # B is tiny; unrolled
        pb = pooled[b * cw:(b + 1) * cw, :]                       # (cw, 1)
        tb = jnp.maximum(
            jnp.dot(w1e, pb, preferred_element_type=jnp.float32) + b1e, 0.0)
        yb = jnp.maximum(
            jnp.dot(w2e, tb, preferred_element_type=jnp.float32) + b2e, 0.0)
        ys.append(yb)
    y = jnp.concatenate(ys, axis=0)                               # (N, 1)
    scale = _gauss_projection(y)                                  # (N, 1)
    o_ref[...] = (x * scale).astype(o_ref.dtype)                  # broadcast over lanes


# ---------------------------------------------------------------------------
# Streaming (large-x) path kernels.
# ---------------------------------------------------------------------------
def _pool_kernel(x_ref, p_ref):
    # (tn, S) -> (tn, 1).  The narrow output is ~1/S of the block's read
    # traffic, so its masked stores are negligible.
    p_ref[...] = jnp.mean(x_ref[...].astype(jnp.float32), axis=-1, keepdims=True)


def _se_kernel(batch, p_ref, w1_ref, b1_ref, w2_ref, b2_ref, s_ref):
    # p_ref / s_ref: (B, C, W).  fc1 contracts the channel axis, fc2 the width
    # axis.  fc2 contraction is expressed with dot_general on w2's last dim so
    # no host-side w2.T is needed.
    w1, b1 = w1_ref[...], b1_ref[...]     # (C, C), (C, 1)
    w2, b2 = w2_ref[...], b2_ref[...]     # (W, W), (1, W)
    ys = []
    for b in range(batch):
        p = p_ref[b]                      # (C, W)
        t = jnp.maximum(
            jnp.dot(w1, p, preferred_element_type=jnp.float32) + b1, 0.0)
        # y[c, k] = sum_m t[c, m] * w2[k, m]   (== t @ w2.T without a transpose)
        y = jnp.maximum(
            lax.dot_general(t, w2, (((1,), (1,)), ((), ())),
                            preferred_element_type=jnp.float32) + b2, 0.0)
        ys.append(y)
    y3 = jnp.stack(ys, axis=0)            # (B, C, W)
    s_ref[...] = _gauss_projection(y3)


def _scale_mul_kernel(x_ref, s_ref, o_ref):
    # (tn, S) * (tn, 1) broadcast over the spatial lanes.
    o_ref[...] = (x_ref[...].astype(jnp.float32) * s_ref[...]).astype(o_ref.dtype)


# ---------------------------------------------------------------------------
# Wrapper.
# ---------------------------------------------------------------------------
def _row_multiple(itemsize):
    # Native sublane packing: f32 -> 8 rows/vreg, bf16 -> 16, int8/fp8 -> 32.
    return 8 * max(1, 4 // max(itemsize, 1))


def _choose_row_tile(n_rows, n_cols, itemsize):
    """Rows per block for the streaming pool / multiply passes."""
    mult = _row_multiple(itemsize)
    if n_rows <= mult:
        return n_rows                                    # full dim: always legal
    bytes_per_row = max(n_cols * itemsize, 1)
    tn = _BLOCK_BYTES_TARGET // bytes_per_row
    tn = min(tn, _ROW_TILE_MAX, n_rows)
    tn = max(mult, (tn // mult) * mult)
    if tn >= n_rows:
        # Keep >= 2 grid steps so both v7x TensorCores get work on the
        # "parallel" axis (near-zero cost on single-TC v5e/v6e).
        half = -(-n_rows // 2)
        tn = ((half + mult - 1) // mult) * mult
    return tn


def se_block_pallas(x, w1, b1, w2, b2, *, use_fused=None):
    B, C, W, H, D = x.shape
    N, S = B * C * W, H * D
    CW = C * W
    f32 = jnp.float32

    x2 = x.reshape(N, S)                  # free row-major reshape, native dtype
    itemsize = jnp.dtype(x.dtype).itemsize
    w1 = w1.astype(f32)
    b1 = b1.astype(f32)
    w2 = w2.astype(f32)
    b2 = b2.astype(f32)

    if use_fused is None:
        use_fused = (N * S * itemsize <= _FUSED_BYTES_MAX) and (CW <= _FUSED_CW_MAX)

    if use_fused:
        # kron(w1, I_W) contracts the channel axis and kron(I_C, w2) contracts
        # the width axis directly on the flat (C*W, 1) pooled column vector.
        w1e = jnp.kron(w1, jnp.eye(W, dtype=f32))                 # (CW, CW)
        w2e = jnp.kron(jnp.eye(C, dtype=f32), w2)                 # (CW, CW)
        b1e = jnp.repeat(b1, W).reshape(CW, 1)
        b2e = jnp.tile(b2, C).reshape(CW, 1)
        out = pl.pallas_call(
            functools.partial(_fused_kernel, B, CW),
            out_shape=jax.ShapeDtypeStruct((N, S), x.dtype),
            grid=(1,),
            in_specs=[pl.BlockSpec((N, S), lambda i: (0, 0)),
                      pl.BlockSpec((CW, CW), lambda i: (0, 0)),
                      pl.BlockSpec((CW, 1), lambda i: (0, 0)),
                      pl.BlockSpec((CW, CW), lambda i: (0, 0)),
                      pl.BlockSpec((CW, 1), lambda i: (0, 0))],
            out_specs=pl.BlockSpec((N, S), lambda i: (0, 0)),
            compiler_params=pltpu.CompilerParams(
                vmem_limit_bytes=_VMEM_LIMIT_BYTES),
        )(x2, w1e, b1e, w2e, b2e)
        return out.reshape(B, C, W, H, D)

    # ---- streaming path: two large passes over x + one tiny SE kernel ----
    tn = _choose_row_tile(N, S, itemsize)
    grid = (pl.cdiv(N, tn),)
    stream_params = pltpu.CompilerParams(
        dimension_semantics=("parallel",),
        vmem_limit_bytes=_VMEM_LIMIT_BYTES)

    # TODO(synk): for extremely large H*D (single-row blocks over the byte
    # budget), also tile S as an "arbitrary" reduction axis with a partial-sum
    # accumulator to bound per-block VMEM on v7x's 64 MiB.

    # 1) adaptive average pool over (H, D): (N, S) -> (N, 1)
    pooled = pl.pallas_call(
        _pool_kernel,
        out_shape=jax.ShapeDtypeStruct((N, 1), f32),
        grid=grid,
        in_specs=[pl.BlockSpec((tn, S), lambda i: (i, 0))],
        out_specs=pl.BlockSpec((tn, 1), lambda i: (i, 0)),
        compiler_params=stream_params,
    )(x2)

    # 2) fc1 + fc2 + GaussProjection fused in a single tiny call (only free
    #    row-major reshapes between stages; no transposes, no host-side w2.T).
    scale = pl.pallas_call(
        functools.partial(_se_kernel, B),
        out_shape=jax.ShapeDtypeStruct((B, C, W), f32),
        grid=(1,),
        in_specs=[pl.BlockSpec((B, C, W), lambda i: (0, 0, 0)),
                  pl.BlockSpec((C, C), lambda i: (0, 0)),
                  pl.BlockSpec((C, 1), lambda i: (0, 0)),
                  pl.BlockSpec((W, W), lambda i: (0, 0)),
                  pl.BlockSpec((1, W), lambda i: (0, 0))],
        out_specs=pl.BlockSpec((B, C, W), lambda i: (0, 0, 0)),
        compiler_params=pltpu.CompilerParams(
            vmem_limit_bytes=_VMEM_LIMIT_BYTES),
    )(pooled.reshape(B, C, W), w1, b1.reshape(C, 1), w2, b2.reshape(1, W))

    # 3) out = x * scale (broadcast over spatial lanes).
    #    input_output_aliases={0: 0} is intentionally not used: x2 is not a
    #    donated buffer here, so XLA would insert a full-size copy for the alias.
    out = pl.pallas_call(
        _scale_mul_kernel,
        out_shape=jax.ShapeDtypeStruct((N, S), x.dtype),
        grid=grid,
        in_specs=[pl.BlockSpec((tn, S), lambda i: (i, 0)),
                  pl.BlockSpec((tn, 1), lambda i: (i, 0))],
        out_specs=pl.BlockSpec((tn, S), lambda i: (i, 0)),
        compiler_params=stream_params,
    )(x2, scale.reshape(N, 1))

    return out.reshape(B, C, W, H, D)


def se_block_ref(x, w1, b1, w2, b2):
    # pure-JAX reference mirroring the PyTorch forward
    pooled = x.mean(axis=(3, 4))                                             # (B, C, W)
    t = jnp.maximum(jnp.einsum('ij,bjw->biw', w1, pooled) + b1[None, :, None], 0.0)
    y = jnp.maximum(jnp.einsum('bcm,km->bck', t, w2) + b2[None, None, :], 0.0)
    mean = jnp.mean(y)
    std = jnp.std(y, ddof=1)
    sigma = jnp.sqrt(2.0 * jnp.pi) * std
    scale = jnp.exp(-(y - mean) ** 2 / (2.0 * std * std)) / sigma
    return x * scale[..., None, None]


if __name__ == "__main__":
    # ch_in = C = 4, ch_out = W = 8 (the forward requires fc1 dim == C, fc2 dim == W)
    B, C, W, H, D = 2, 4, 8, 16, 16
    key = jax.random.PRNGKey(0)
    kx, k1, k2, k3, k4 = jax.random.split(key, 5)
    x = jax.random.normal(kx, (B, C, W, H, D), dtype=jnp.float32)
    w1 = 0.5 * jax.random.normal(k1, (C, C), dtype=jnp.float32)
    b1 = 0.1 * jax.random.normal(k2, (C,), dtype=jnp.float32)
    w2 = 0.5 * jax.random.normal(k3, (W, W), dtype=jnp.float32)
    b2 = 0.1 * jax.random.normal(k4, (W,), dtype=jnp.float32)

    ref = se_block_ref(x, w1, b1, w2, b2)

    # Fast path: single fused kernel (whole x fits in VMEM at this size).
    out_fused = jax.block_until_ready(jax.jit(se_block_pallas)(x, w1, b1, w2, b2))
    assert jnp.allclose(out_fused, ref, rtol=1e-4, atol=1e-5), \
        float(jnp.max(jnp.abs(out_fused - ref)))

    # Streaming 3-call path (what large inputs use); forced here for coverage.
    stream_fn = jax.jit(functools.partial(se_block_pallas, use_fused=False))
    out_stream = jax.block_until_ready(stream_fn(x, w1, b1, w2, b2))
    assert jnp.allclose(out_stream, ref, rtol=1e-4, atol=1e-5), \
        float(jnp.max(jnp.abs(out_stream - ref)))

    print("KERNEL_OK")
</pallas_src>

<mosaic_0001>
module attributes {stable_mosaic.version = 11 : i64} {
  func.func @_fused_kernel(%arg0: i32, %arg1: memref<64x256xf32, #tpu.memory_space<vmem>>, %arg2: memref<32x32xf32, #tpu.memory_space<vmem>>, %arg3: memref<32x1xf32, #tpu.memory_space<vmem>>, %arg4: memref<32x32xf32, #tpu.memory_space<vmem>>, %arg5: memref<32x1xf32, #tpu.memory_space<vmem>>, %arg6: memref<64x256xf32, #tpu.memory_space<vmem>>) attributes {dimension_semantics = [#tpu.dimension_semantics<arbitrary>], iteration_bounds = array<i64: 1>, scalar_prefetch = 0 : i64, scratch_operands = 0 : i64, tpu.core_type = #tpu.core_type<tc>, window_params = [{pipeline_mode = #tpu.pipeline_mode<synchronous>, transform_indices = @transform_0, window_bounds = array<i64: 64, 256>}, {pipeline_mode = #tpu.pipeline_mode<synchronous>, transform_indices = @transform_1, window_bounds = array<i64: 32, 32>}, {pipeline_mode = #tpu.pipeline_mode<synchronous>, transform_indices = @transform_2, window_bounds = array<i64: 32, 1>}, {pipeline_mode = #tpu.pipeline_mode<synchronous>, transform_indices = @transform_3, window_bounds = array<i64: 32, 32>}, {pipeline_mode = #tpu.pipeline_mode<synchronous>, transform_indices = @transform_4, window_bounds = array<i64: 32, 1>}, {pipeline_mode = #tpu.pipeline_mode<synchronous>, transform_indices = @transform_5, window_bounds = array<i64: 64, 256>}]} {
    %c0 = arith.constant 0 : index
    %c0_0 = arith.constant 0 : index
    %0 = vector.load %arg1[%c0, %c0_0] : memref<64x256xf32, #tpu.memory_space<vmem>>, vector<64x256xf32>
    %cst = arith.constant dense<0.000000e+00> : vector<64xf32>
    %1 = vector.multi_reduction <add>, %0, %cst [1] : vector<64x256xf32> to vector<64xf32>
    %2 = vector.shape_cast %1 : vector<64xf32> to vector<64x1xf32>
    %cst_1 = arith.constant 2.560000e+02 : f32
    %3 = vector.broadcast %cst_1 : f32 to vector<64x1xf32>
    %4 = arith.divf %2, %3 : vector<64x1xf32>
    %c0_2 = arith.constant 0 : index
    %c0_3 = arith.constant 0 : index
    %5 = vector.load %arg2[%c0_2, %c0_3] : memref<32x32xf32, #tpu.memory_space<vmem>>, vector<32x32xf32>
    %c0_4 = arith.constant 0 : index
    %c0_5 = arith.constant 0 : index
    %6 = vector.load %arg3[%c0_4, %c0_5] : memref<32x1xf32, #tpu.memory_space<vmem>>, vector<32x1xf32>
    %c0_6 = arith.constant 0 : index
    %c0_7 = arith.constant 0 : index
    %7 = vector.load %arg4[%c0_6, %c0_7] : memref<32x32xf32, #tpu.memory_space<vmem>>, vector<32x32xf32>
    %c0_8 = arith.constant 0 : index
    %c0_9 = arith.constant 0 : index
    %8 = vector.load %arg5[%c0_8, %c0_9] : memref<32x1xf32, #tpu.memory_space<vmem>>, vector<32x1xf32>
    %9 = vector.extract_strided_slice %4 {offsets = [0, 0], sizes = [32, 1], strides = [1, 1]} : vector<64x1xf32> to vector<32x1xf32>
    %cst_10 = arith.constant dense<0.000000e+00> : vector<32x1xf32>
    %10 = tpu.matmul %5, %9, %cst_10 {dimension_numbers = #tpu.dot_dimension_numbers<[1], [0], [0], [1], [0, 0, 1, 1], [], []>} : vector<32x32xf32>, vector<32x1xf32>, vector<32x1xf32> -> vector<32x1xf32>
    %11 = arith.addf %10, %6 : vector<32x1xf32>
    %cst_11 = arith.constant 0.000000e+00 : f32
    %12 = vector.broadcast %cst_11 : f32 to vector<32x1xf32>
    %13 = arith.maximumf %11, %12 : vector<32x1xf32>
    %cst_12 = arith.constant dense<0.000000e+00> : vector<32x1xf32>
    %14 = tpu.matmul %7, %13, %cst_12 {dimension_numbers = #tpu.dot_dimension_numbers<[1], [0], [0], [1], [0, 0, 1, 1], [], []>} : vector<32x32xf32>, vector<32x1xf32>, vector<32x1xf32> -> vector<32x1xf32>
    %15 = arith.addf %14, %8 : vector<32x1xf32>
    %cst_13 = arith.constant 0.000000e+00 : f32
    %16 = vector.broadcast %cst_13 : f32 to vector<32x1xf32>
    %17 = arith.maximumf %15, %16 : vector<32x1xf32>
    %18 = vector.extract_strided_slice %4 {offsets = [32, 0], sizes = [32, 1], strides = [1, 1]} : vector<64x1xf32> to vector<32x1xf32>
    %cst_14 = arith.constant dense<0.000000e+00> : vector<32x1xf32>
    %19 = tpu.matmul %5, %18, %cst_14 {dimension_numbers = #tpu.dot_dimension_numbers<[1], [0], [0], [1], [0, 0, 1, 1], [], []>} : vector<32x32xf32>, vector<32x1xf32>, vector<32x1xf32> -> vector<32x1xf32>
    %20 = arith.addf %19, %6 : vector<32x1xf32>
    %cst_15 = arith.constant 0.000000e+00 : f32
    %21 = vector.broadcast %cst_15 : f32 to vector<32x1xf32>
    %22 = arith.maximumf %20, %21 : vector<32x1xf32>
    %cst_16 = arith.constant dense<0.000000e+00> : vector<32x1xf32>
    %23 = tpu.matmul %7, %22, %cst_16 {dimension_numbers = #tpu.dot_dimension_numbers<[1], [0], [0], [1], [0, 0, 1, 1], [], []>} : vector<32x32xf32>, vector<32x1xf32>, vector<32x1xf32> -> vector<32x1xf32>
    %24 = arith.addf %23, %8 : vector<32x1xf32>
    %cst_17 = arith.constant 0.000000e+00 : f32
    %25 = vector.broadcast %cst_17 : f32 to vector<32x1xf32>
    %26 = arith.maximumf %24, %25 : vector<32x1xf32>
    %27 = tpu.concatenate %17, %26 in 0 : vector<32x1xf32>, vector<32x1xf32> -> vector<64x1xf32>
    %28 = vector.shape_cast %27 : vector<64x1xf32> to vector<1x64x1xf32>
    %cst_18 = arith.constant dense<0.000000e+00> : vector<1xf32>
    %29 = vector.multi_reduction <add>, %28, %cst_18 [1, 2] : vector<1x64x1xf32> to vector<1xf32>
    %30 = vector.shape_cast %29 : vector<1xf32> to vector<1x1x1xf32>
    %31 = vector.extract %30[0, 0, 0] : f32 from vector<1x1x1xf32>
    %cst_19 = arith.constant 6.400000e+01 : f32
    %32 = arith.divf %31, %cst_19 : f32
    %33 = vector.broadcast %32 : f32 to vector<64x1xf32>
    %34 = arith.subf %27, %33 : vector<64x1xf32>
    %35 = arith.mulf %34, %34 : vector<64x1xf32>
    %36 = vector.shape_cast %35 : vector<64x1xf32> to vector<1x64x1xf32>
    %cst_20 = arith.constant dense<0.000000e+00> : vector<1xf32>
    %37 = vector.multi_reduction <add>, %36, %cst_20 [1, 2] : vector<1x64x1xf32> to vector<1xf32>
    %38 = vector.shape_cast %37 : vector<1xf32> to vector<1x1x1xf32>
    %39 = vector.extract %38[0, 0, 0] : f32 from vector<1x1x1xf32>
    %cst_21 = arith.constant 6.300000e+01 : f32
    %40 = arith.divf %39, %cst_21 : f32
    %41 = math.sqrt %40 : f32
    %cst_22 = arith.constant 6.28318548 : f32
    %42 = math.sqrt %cst_22 : f32
    %43 = arith.mulf %42, %41 : f32
    %44 = vector.broadcast %32 : f32 to vector<64x1xf32>
    %45 = arith.subf %27, %44 : vector<64x1xf32>
    %46 = arith.mulf %45, %45 : vector<64x1xf32>
    %cst_23 = arith.constant 0.000000e+00 : f32
    %47 = vector.broadcast %cst_23 : f32 to vector<64x1xf32>
    %48 = arith.subf %47, %46 : vector<64x1xf32>
    %cst_24 = arith.constant 2.000000e+00 : f32
    %49 = arith.mulf %cst_24, %40 : f32
    %50 = vector.broadcast %49 : f32 to vector<64x1xf32>
    %51 = arith.divf %48, %50 : vector<64x1xf32>
    %52 = math.exp %51 : vector<64x1xf32>
    %53 = vector.broadcast %43 : f32 to vector<64x1xf32>
    %54 = arith.divf %52, %53 : vector<64x1xf32>
    %55 = vector.broadcast %54 : vector<64x1xf32> to vector<64x256xf32>
    %56 = arith.mulf %0, %55 : vector<64x256xf32>
    %c0_25 = arith.constant 0 : index
    %c0_26 = arith.constant 0 : index
    %57 = vector.load %arg6[%c0_25, %c0_26] : memref<64x256xf32, #tpu.memory_space<vmem>>, vector<64x256xf32>
    tpu.vector_store %arg6[%c0_25, %c0_26], %56 {strides = array<i32>} : memref<64x256xf32, #tpu.memory_space<vmem>>, vector<64x256xf32>,
    return
  }
  func.func @transform_0(%arg0: i32) -> (i32, i32) {
    %c0_i32 = arith.constant 0 : i32
    %c0_i32_0 = arith.constant 0 : i32
    %c0_i32_1 = arith.constant 0 : i32
    return %c0_i32, %c0_i32_0 : i32, i32
  }
  func.func @transform_1(%arg0: i32) -> (i32, i32) {
    %c0_i32 = arith.constant 0 : i32
    %c0_i32_0 = arith.constant 0 : i32
    %c0_i32_1 = arith.constant 0 : i32
    return %c0_i32, %c0_i32_0 : i32, i32
  }
  func.func @transform_2(%arg0: i32) -> (i32, i32) {
    %c0_i32 = arith.constant 0 : i32
    %c0_i32_0 = arith.constant 0 : i32
    %c0_i32_1 = arith.constant 0 : i32
    return %c0_i32, %c0_i32_0 : i32, i32
  }
  func.func @transform_3(%arg0: i32) -> (i32, i32) {
    %c0_i32 = arith.constant 0 : i32
    %c0_i32_0 = arith.constant 0 : i32
    %c0_i32_1 = arith.constant 0 : i32
    return %c0_i32, %c0_i32_0 : i32, i32
  }
  func.func @transform_4(%arg0: i32) -> (i32, i32) {
    %c0_i32 = arith.constant 0 : i32
    %c0_i32_0 = arith.constant 0 : i32
    %c0_i32_1 = arith.constant 0 : i32
    return %c0_i32, %c0_i32_0 : i32, i32
  }
  func.func @transform_5(%arg0: i32) -> (i32, i32) {
    %c0_i32 = arith.constant 0 : i32
    %c0_i32_0 = arith.constant 0 : i32
    %c0_i32_1 = arith.constant 0 : i32
    return %c0_i32, %c0_i32_0 : i32, i32
  }
}

</mosaic_0001>

<bundles_post_ra>
// kernel: tile.8
= control target key start
LH: loop header
LB: loop body
LE: loop exit
PB: predicated region body
PF: predicated region fallthrough
CT: control target
= control target key end

     0   :  { %s22_s0 = inlined_call_operand.vmem [shape: f32[8], index: 0, kind: input, shape index: {}]   ;;  %s23_s1 = inlined_call_operand.vmem [shape: f32[4,8], index: 1, kind: output, shape index: {}]  }
   0x1   :  { %v4_v0 = vld [vmem:[%s22_s0] ss:$0 sm:$0xff] }
   0x2   :  { %5 = vst [vmem:[%s23_s1] sm:$0xf] %v4_v0 }

// kernel: tile.0
= control target key start
LH: loop header
LB: loop body
LE: loop exit
PB: predicated region body
PF: predicated region fallthrough
CT: control target
= control target key end

     0   :  { %s67_s8 = smov 125   ;;  %vm8_vm0 = vcmask 7168   ;;  %s68_s11 = smov 126   ;;  %s118_s0 = inlined_call_operand.vmem [shape: f32[4,8], index: 0, kind: input, shape index: {}]   ;;  %s119_s1 = inlined_call_operand.vmem [shape: f32[32,1], index: 1, kind: output, shape index: {}]  }
   0x1   :  { %v5_v0 = vld [vmem:[%s118_s0] sm:$0xf]  ;;  %s66_s0 = smov 127   ;;  %s69_s12 = smov 124  }
   0x2   :  { %6 = vst [vmem:[#allocation0] sm:$0xf] %v5_v0  ;;  %s70_s13 = smov 123   ;;  %s71_s14 = smov 122  }
   0x3   :  { %s72_s15 = smov 121  }
   0x9   :  { %v10_v1 = vld [vmem:[#allocation0] sm:$0xf]  }
   0xa   :  { %v22_v2 = vld [vmem:[#allocation0] sm:$0xf]   ;;  %11 = vrot.lane.b32.xlu0 %v10_v1, %s66_s0 }
   0xb   :  { %23 = vrot.lane.b32.xlu1 %v22_v2, %s67_s8  ;;  %v16_v3 = vld [vmem:[#allocation0] sm:$0xf]  }
   0xc   :  { %v28_v4 = vld [vmem:[#allocation0] sm:$0xf]  }
   0xd   :  { %v7_v5 = vld [vmem:[#allocation0] sm:$0xf]  }
   0xe   :  { %9 = vst.msk [vmem:[%s119_s1] ss:$8 sm:$0xf] %vm8_vm0, %v7_v5   ;;  %17 = vrot.lane.b32.xlu0 %v16_v3, %s68_s11  ;;  %v34_v6 = vld [vmem:[#allocation0] sm:$0xf]  }
   0xf   :  { %29 = vrot.lane.b32.xlu1 %v28_v4, %s69_s12  ;;  %v40_v7 = vld [vmem:[#allocation0] sm:$0xf]  }
  0x10   :  { %v46_v8 = vld [vmem:[#allocation0] sm:$0xf]  }
  0x12   :  { %35 = vrot.lane.b32.xlu0 %v34_v6, %s70_s13 }
  0x13   :  { %41 = vrot.lane.b32.xlu1 %v40_v7, %s71_s14 }
  0x16   :  { %47 = vrot.lane.b32.xlu0 %v46_v8, %s72_s15 }
  0x7c   :  { %v12_v9 = vpop.permute.xlu0 %11  }
  0x7d   :  { %v24_v10 = vpop.permute.xlu1 %23   ;;  %52 = vst.msk [vmem:[%s119_s1 + $0x1] ss:$8 sm:$0xf] %vm8_vm0, %v12_v9  }
  0x7e   :  { %54 = vst.msk [vmem:[%s119_s1 + $0x3] ss:$8 sm:$0xf] %vm8_vm0, %v24_v10  }
  0x80   :  { %v18_v11 = vpop.permute.xlu0 %17  }
  0x81   :  { %v30_v12 = vpop.permute.xlu1 %29   ;;  %53 = vst.msk [vmem:[%s119_s1 + $0x2] ss:$8 sm:$0xf] %vm8_vm0, %v18_v11  }
  0x82   :  { %55 = vst.msk [vmem:[%s119_s1 + $0x4] ss:$8 sm:$0xf] %vm8_vm0, %v30_v12  }
  0x84   :  { %v36_v13 = vpop.permute.xlu0 %35  }
  0x85   :  { %v42_v14 = vpop.permute.xlu1 %41   ;;  %56 = vst.msk [vmem:[%s119_s1 + $0x5] ss:$8 sm:$0xf] %vm8_vm0, %v36_v13  }
  0x86   :  { %57 = vst.msk [vmem:[%s119_s1 + $0x6] ss:$8 sm:$0xf] %vm8_vm0, %v42_v14  }
  0x88   :  { %v48_v15 = vpop.permute.xlu0 %47  }
  0x89   :  { %58 = vst.msk [vmem:[%s119_s1 + $0x7] ss:$8 sm:$0xf] %vm8_vm0, %v48_v15  }

// kernel: se_block_pallas.1
= control target key start
LH: loop header
LB: loop body
LE: loop exit
PB: predicated region body
PF: predicated region fallthrough
CT: control target
= control target key end

     0   :  { %vm85_vm0 = vcmask 261120   ;;  %vm466_vm1 = vcmask 7168   ;;  %s1095_s0 = inlined_call_operand.vmem [shape: f32[64,256], index: 0, kind: input, shape index: {}]   ;;  %s1096_s1 = inlined_call_operand.vmem [shape: f32[32,32], index: 1, kind: input, shape index: {}]   ;;  %s1097_s3 = inlined_call_operand.vmem [shape: f32[32,32], index: 3, kind: input, shape index: {}]   ;;  %s1098_s2 = inlined_call_operand.vmem [shape: f32[32,1], index: 2, kind: input, shape index: {}]   ;;  %s1099_s4 = inlined_call_operand.vmem [shape: f32[32,1], index: 4, kind: input, shape index: {}]   ;;  %s1100_s5 = inlined_call_operand.vmem [shape: f32[64,256], index: 5, kind: output, shape index: {}]  }
   0x1   :  { %v838_v0 = vld [vmem:[%s1095_s0 + $0x30] sm:$0xff]  ;;  %v843_v1 = vld [vmem:[%s1095_s0 + $0x38] sm:$0xff]  ;;  %v848_v2 = vld [vmem:[%s1095_s0 + $0x20] sm:$0xff] }
   0x2   :  { %v45_v3 = vadd.f32 %v843_v1, %v838_v0  ;;  %v855_v4 = vld [vmem:[%s1095_s0 + $0x28] sm:$0xff]  ;;  %v860_v5 = vld [vmem:[%s1095_s0 + $0x10] sm:$0xff]  ;;  %v865_v6 = vld [vmem:[%s1095_s0 + $0x18] sm:$0xff] }
   0x3   :  { %v39_v7 = vadd.f32 %v865_v6, %v860_v5  ;;  %v872_v8 = vld [vmem:[%s1095_s0] sm:$0xff]  ;;  %v877_v9 = vld [vmem:[%s1095_s0 + $0x8] sm:$0xff]  ;;  %v42_v10 = vadd.f32 %v855_v4, %v848_v2  ;;  %v886_v12 = vld [vmem:[%s1095_s0 + $0x70] sm:$0xff] }
   0x4   :  { %46 = vadd.xlane.f32.xlu0 %v45_v3  ;;  %v36_v11 = vadd.f32 %v877_v9, %v872_v8  ;;  %v891_v13 = vld [vmem:[%s1095_s0 + $0x78] sm:$0xff]  ;;  %v896_v14 = vld [vmem:[%s1095_s0 + $0x60] sm:$0xff]  ;;  %v901_v15 = vld [vmem:[%s1095_s0 + $0x68] sm:$0xff] }
   0x5   :  { %40 = vadd.xlane.f32.xlu1 %v39_v7  ;;  %v57_v16 = vadd.f32 %v891_v13, %v886_v12  ;;  %v54_v17 = vadd.f32 %v901_v15, %v896_v14  ;;  %v910_v18 = vld [vmem:[%s1095_s0 + $0x50] sm:$0xff]  ;;  %v915_v19 = vld [vmem:[%s1095_s0 + $0x58] sm:$0xff]  ;;  %v920_v20 = vld [vmem:[%s1095_s0 + $0x40] sm:$0xff] }
   0x6   :  { %v925_v21 = vld [vmem:[%s1095_s0 + $0x48] sm:$0xff]  ;;  %v51_v22 = vadd.f32 %v915_v19, %v910_v18  ;;  %v69_v24 = vld [vmem:[%s1096_s1] sm:$0xff]  ;;  %v71_v38 = vld [vmem:[%s1096_s1 + $0x10] sm:$0xff] }
   0x7   :  { %v48_v23 = vadd.f32 %v925_v21, %v920_v20  ;;  %725 = vmatprep.mubr.msk.f32.mxu0 %vm85_vm0, %v69_v24  ;;  %v70_v36 = vld [vmem:[%s1096_s1 + $0x8] sm:$0xff]  ;;  %v72_v42 = vld [vmem:[%s1096_s1 + $0x18] sm:$0xff]  ;;  %v77_v44 = vld [vmem:[%s1097_s3] sm:$0xff] }
   0x8   :  { %43 = vadd.xlane.f32.xlu0 %v42_v10  ;;  %739 = vmatprep.mubr.msk.f32.mxu1 %vm85_vm0, %v77_v44  ;;  %v76_v47 = vld [vmem:[%s1098_s2 + $0x18] sm:$0xff]  ;;  %v74_v48 = vld [vmem:[%s1098_s2 + $0x8] sm:$0xff]  ;;  %v75_v50 = vld [vmem:[%s1098_s2 + $0x10] sm:$0xff] }
   0x9   :  { %37 = vadd.xlane.f32.xlu1 %v36_v11  ;;  %v73_v52 = vld [vmem:[%s1098_s2] sm:$0xff]  ;;  %v78_v10 = vld [vmem:[%s1097_s3 + $0x8] sm:$0xff] }
   0xc   :  { %58 = vadd.xlane.f32.xlu0 %v57_v16 }
   0xd   :  { %55 = vadd.xlane.f32.xlu1 %v54_v17 }
  0x10   :  { %52 = vadd.xlane.f32.xlu0 %v51_v22  ;;  %v79_v22 = vld [vmem:[%s1097_s3 + $0x10] sm:$0xff] }
  0x11   :  { %49 = vadd.xlane.f32.xlu1 %v48_v23 }
  0x8d   :  { %v47_v25 = vpop.xlane.xlu0 %46 }
  0x8e   :  { %v64_v26 = vmul.f32 0.00390625, %v47_v25  ;;  %v41_v27 = vpop.xlane.xlu1 %40  ;;  %v80_v25 = vld [vmem:[%s1097_s3 + $0x18] sm:$0xff] }
  0x8f   :  { %v62_v31 = vmul.f32 0.00390625, %v41_v27 }
  0x90   :  { %717 = vmatprep.subr.mxu0 %v64_v26 }
  0x91   :  { %718 = vmatpush3.msra.mxu0 %v64_v26  ;;  %v44_v28 = vpop.xlane.xlu0 %43 }
  0x92   :  { %v63_v29 = vmul.f32 0.00390625, %v44_v28  ;;  %v38_v30 = vpop.xlane.xlu1 %37  ;;  %v82_v28 = vld [vmem:[%s1099_s4 + $0x8] sm:$0xff] }
  0x93   :  { %v61_v32 = vmul.f32 0.00390625, %v38_v30  ;;  %v81_v30 = vld [vmem:[%s1099_s4] sm:$0xff] }
  0x94   :  { %719 = vmatprep.subr.mxu0 %v63_v29 }
  0x95   :  { %720 = vmatpush3.msra.mxu0 %v63_v29  ;;  %v59_v33 = vpop.xlane.xlu0 %58 }
  0x96   :  { %721 = vmatprep.subr.mxu0 %v62_v31  ;;  %v68_v34 = vmul.f32 0.00390625, %v59_v33  ;;  %v56_v35 = vpop.xlane.xlu1 %55  ;;  %v84_v33 = vld [vmem:[%s1099_s4 + $0x18] sm:$0xff] }
  0x97   :  { %722 = vmatpush3.msra.mxu0 %v62_v31  ;;  %v67_v37 = vmul.f32 0.00390625, %v56_v35 }
  0x98   :  { %723 = vmatprep.subr.mxu0 %v61_v32 }
  0x99   :  { %724 = vmatpush3.msra.mxu0 %v61_v32  ;;  %v53_v39 = vpop.xlane.xlu0 %52 }
  0x9a   :  { %726 = vmatmul.mubr.msk.f32.vlgmr.msra.gmra.mxu0 %vm85_vm0, %v70_v36  ;;  %745 = vmatprep.subr.mxu0 %v68_v34  ;;  %v66_v40 = vmul.f32 0.00390625, %v53_v39  ;;  %v50_v41 = vpop.xlane.xlu1 %49 }
  0x9b   :  { %746 = vmatpush3.msra.mxu0 %v68_v34  ;;  %728 = vmatprep.mubr.msk.f32.mxu0 %vm85_vm0, %v71_v38  ;;  %v65_v43 = vmul.f32 0.00390625, %v50_v41 }
  0x9c   :  { %747 = vmatprep.subr.mxu0 %v67_v37 }
  0x9d   :  { %748 = vmatpush3.msra.mxu0 %v67_v37 }
  0x9e   :  { %729 = vmatmul.mubr.msk.f32.gmra.mxu0 %vm85_vm0, %v72_v42  ;;  %749 = vmatprep.subr.mxu0 %v66_v40 }
  0x9f   :  { %750 = vmatpush3.msra.mxu0 %v66_v40  ;;  %753 = vmatprep.mubr.msk.f32.mxu0 %vm85_vm0, %v69_v24 }
  0xa0   :  { %751 = vmatprep.subr.mxu0 %v65_v43 }
  0xa1   :  { %752 = vmatpush3.msra.mxu0 %v65_v43 }
  0xa2   :  { %754 = vmatmul.mubr.msk.f32.vlgmr.msra.gmra.mxu0 %vm85_vm0, %v70_v36  ;;  %v83_v36 = vld [vmem:[%s1099_s4 + $0x10] sm:$0xff] }
  0xa3   :  { %756 = vmatprep.mubr.msk.f32.mxu0 %vm85_vm0, %v71_v38 }
  0xa6   :  { %757 = vmatmul.mubr.msk.f32.gmra.mxu0 %vm85_vm0, %v72_v42 }
 0x15a   :  { %v727_v45 = vpop.f32.mrf.mxu0 }
 0x15b   :  { %v170_v54 = vadd.f32 %v727_v45, %v74_v48 }
 0x15c   :  { %v164_v46 = vpop.f32.mrf.mxu0 }
 0x15d   :  { %v165_v58 = vadd.f32 %v164_v46, %v73_v52  ;;  %v184_v61 = vmax.f32 %v170_v54, 0.0 }
 0x15e   :  { %v730_v49 = vpop.f32.mrf.mxu0 }
 0x15f   :  { %v180_v51 = vadd.f32 %v730_v49, %v76_v47  ;;  %v183_v63 = vmax.f32 %v165_v58, 0.0 }
 0x160   :  { %v174_v53 = vpop.f32.mrf.mxu0 }
 0x161   :  { %v186_v55 = vmax.f32 %v180_v51, 0.0  ;;  %v175_v56 = vadd.f32 %v174_v53, %v75_v50 }
 0x162   :  { %v755_v57 = vpop.f32.mrf.mxu0 }
 0x163   :  { %v185_v59 = vmax.f32 %v175_v56, 0.0  ;;  %731 = vmatprep.subr.mxu1 %v186_v55  ;;  %v360_v11 = vadd.f32 %v755_v57, %v74_v48 }
 0x164   :  { %732 = vmatpush3.msra.mxu1 %v186_v55  ;;  %v354_v60 = vpop.f32.mrf.mxu0 }
 0x165   :  { %733 = vmatprep.subr.mxu1 %v185_v59  ;;  %v355_v23 = vadd.f32 %v354_v60, %v73_v52  ;;  %v374_v26 = vmax.f32 %v360_v11, 0.0 }
 0x166   :  { %734 = vmatpush3.msra.mxu1 %v185_v59  ;;  %v758_v62 = vpop.f32.mrf.mxu0 }
 0x167   :  { %v370_v3 = vadd.f32 %v758_v62, %v76_v47  ;;  %735 = vmatprep.subr.mxu1 %v184_v61  ;;  %v373_v27 = vmax.f32 %v355_v23, 0.0 }
 0x168   :  { %736 = vmatpush3.msra.mxu1 %v184_v61  ;;  %v364_v7 = vpop.f32.mrf.mxu0 }
 0x169   :  { %v376_v16 = vmax.f32 %v370_v3, 0.0  ;;  %v365_v17 = vadd.f32 %v364_v7, %v75_v50  ;;  %737 = vmatprep.subr.mxu1 %v183_v63 }
 0x16a   :  { %738 = vmatpush3.msra.mxu1 %v183_v63 }
 0x16b   :  { %v375_v24 = vmax.f32 %v365_v17, 0.0  ;;  %740 = vmatmul.mubr.msk.f32.vlgmr.msra.gmra.mxu1 %vm85_vm0, %v78_v10  ;;  %759 = vmatprep.subr.mxu1 %v376_v16 }
 0x16c   :  { %760 = vmatpush3.msra.mxu1 %v376_v16  ;;  %742 = vmatprep.mubr.msk.f32.mxu1 %vm85_vm0, %v79_v22 }
 0x16d   :  { %761 = vmatprep.subr.mxu1 %v375_v24 }
 0x16e   :  { %762 = vmatpush3.msra.mxu1 %v375_v24 }
 0x16f   :  { %743 = vmatmul.mubr.msk.f32.gmra.mxu1 %vm85_vm0, %v80_v25  ;;  %763 = vmatprep.subr.mxu1 %v374_v26 }
 0x170   :  { %764 = vmatpush3.msra.mxu1 %v374_v26  ;;  %767 = vmatprep.mubr.msk.f32.mxu1 %vm85_vm0, %v77_v44 }
 0x171   :  { %765 = vmatprep.subr.mxu1 %v373_v27 }
 0x172   :  { %766 = vmatpush3.msra.mxu1 %v373_v27 }
 0x173   :  { %768 = vmatmul.mubr.msk.f32.vlgmr.msra.gmra.mxu1 %vm85_vm0, %v78_v10 }
 0x174   :  { %770 = vmatprep.mubr.msk.f32.mxu1 %vm85_vm0, %v79_v22 }
 0x177   :  { %771 = vmatmul.mubr.msk.f32.gmra.mxu1 %vm85_vm0, %v80_v25 }
 0x22b   :  { %v741_v29 = vpop.f32.mrf.mxu1 }
 0x22c   :  { %v271_v31 = vadd.f32 %v741_v29, %v82_v28 }
 0x22d   :  { %v265_v32 = vpop.f32.mrf.mxu1 }
 0x22e   :  { %v266_v34 = vadd.f32 %v265_v32, %v81_v30  ;;  %v285_v37 = vmax.f32 %v271_v31, 0.0 }
 0x22f   :  { %v744_v35 = vpop.f32.mrf.mxu1 }
 0x230   :  { %v284_v38 = vmax.f32 %v266_v34, 0.0  ;;  %v281_v39 = vadd.f32 %v744_v35, %v84_v33  ;;  %v468_v44 = vsel %vm466_vm1, %v285_v37, 0.0 }
 0x231   :  { %v275_v40 = vpop.f32.mrf.mxu1 }
 0x232   :  { %v467_v41 = vsel %vm466_vm1, %v284_v38, 0.0  ;;  %v276_v42 = vadd.f32 %v275_v40, %v83_v36  ;;  %v287_v45 = vmax.f32 %v281_v39, 0.0 }
 0x233   :  { %v769_v43 = vpop.f32.mrf.mxu1  ;;  %v469_v48 = vadd.f32 %v468_v44, %v467_v41 }
 0x234   :  { %v286_v46 = vmax.f32 %v276_v42, 0.0  ;;  %v449_v47 = vadd.f32 %v769_v43, %v82_v28  ;;  %v472_v54 = vsel %vm466_vm1, %v287_v45, 0.0 }
 0x235   :  { %v443_v49 = vpop.f32.mrf.mxu1 }
 0x236   :  { %v470_v50 = vsel %vm466_vm1, %v286_v46, 0.0  ;;  %v444_v51 = vadd.f32 %v443_v49, %v81_v30  ;;  %v463_v55 = vmax.f32 %v449_v47, 0.0 }
 0x237   :  { %v471_v52 = vadd.f32 %v470_v50, %v469_v48  ;;  %v772_v53 = vpop.f32.mrf.mxu1 }
 0x238   :  { %v462_v56 = vmax.f32 %v444_v51, 0.0  ;;  %v459_v57 = vadd.f32 %v772_v53, %v84_v33  ;;  %v476_v63 = vsel %vm466_vm1, %v463_v55, 0.0 }
 0x239   :  { %v473_v58 = vadd.f32 %v472_v54, %v471_v52  ;;  %v453_v59 = vpop.f32.mrf.mxu1 }
 0x23a   :  { %v474_v60 = vsel %vm466_vm1, %v462_v56, 0.0  ;;  %v454_v61 = vadd.f32 %v453_v59, %v83_v36  ;;  %v465_v3 = vmax.f32 %v459_v57, 0.0 }
 0x23b   :  { %v475_v62 = vadd.f32 %v474_v60, %v473_v58 }
 0x23c   :  { %v464_v7 = vmax.f32 %v454_v61, 0.0  ;;  %v480_v17 = vsel %vm466_vm1, %v465_v3, 0.0 }
 0x23d   :  { %v477_v10 = vadd.f32 %v476_v63, %v475_v62 }
 0x23e   :  { %v478_v11 = vsel %vm466_vm1, %v464_v7, 0.0 }
 0x23f   :  { %v479_v16 = vadd.f32 %v478_v11, %v477_v10 }
 0x241   :  { %v481_v22 = vadd.f32 %v480_v17, %v479_v16  ;;  %v804_v16 = vmov 0  }
 0x242   :  { %781 = vset.pattern.permute.xlu1 %v804_v16  ;;  %780 = vset.pattern.permute.xlu0 %v804_v16 }
 0x243   :  { %482 = vadd.xlane.f32.xlu0 %v481_v22 }
 0x2cc   :  { %v483_v23 = vpop.xlane.xlu0 %482 }
 0x2cd   :  { %v484_v24 = vrot.slane %v483_v23, 4 }
 0x2cf   :  { %v485_v25 = vadd.f32 %v484_v24, %v483_v23 }
 0x2d1   :  { %v486_v26 = vrot.slane %v485_v25, 2 }
 0x2d3   :  { %v487_v27 = vadd.f32 %v486_v26, %v485_v25 }
 0x2d5   :  { %v488_v28 = vrot.slane %v487_v27, 1 }
 0x2d7   :  { %v489_v29 = vadd.f32 %v488_v28, %v487_v27 }
 0x2d9   :  { %773 = vpush %v489_v29 }
 0x30a   :  { %s774_s4 = spop %773 }
 0x30b   :  { %s493_s27 = smul.f32 0.015625, %s774_s4 }
 0x30d   :  { %v494_v30 = vstv %s493_s27 }
 0x30e   :  { %v495_v31 = vsub.f32 %v284_v38, %v494_v30  ;;  %v496_v32 = vsub.f32 %v285_v37, %v494_v30  ;;  %v497_v33 = vsub.f32 %v286_v46, %v494_v30  ;;  %v498_v34 = vsub.f32 %v287_v45, %v494_v30 }
 0x30f   :  { %v499_v35 = vsub.f32 %v462_v56, %v494_v30  ;;  %v500_v41 = vsub.f32 %v463_v55, %v494_v30  ;;  %v501_v48 = vsub.f32 %v464_v7, %v494_v30  ;;  %v502_v46 = vsub.f32 %v465_v3, %v494_v30 }
 0x310   :  { %v503_v36 = vmul.f32 %v495_v31, %v495_v31  ;;  %v504_v39 = vmul.f32 %v496_v32, %v496_v32  ;;  %v505_v40 = vmul.f32 %v497_v33, %v497_v33  ;;  %v1003_v42 = vmul.f32 %v498_v34, %v498_v34 }
 0x311   :  { %v1007_v49 = vmul.f32 %v499_v35, %v499_v35  ;;  %v1010_v45 = vmul.f32 %v500_v41, %v500_v41  ;;  %v1014_v52 = vmul.f32 %v501_v48, %v501_v48  ;;  %v1018_v55 = vmul.f32 %v502_v46, %v502_v46 }
 0x312   :  { %v511_v43 = vsel %vm466_vm1, %v503_v36, 0.0  ;;  %v512_v44 = vsel %vm466_vm1, %v504_v39, 0.0  ;;  %v514_v38 = vsel %vm466_vm1, %v505_v40, 0.0  ;;  %v516_v50 = vsel %vm466_vm1, %v1003_v42, 0.0 }
 0x313   :  { %v513_v47 = vadd.f32 %v512_v44, %v511_v43  ;;  %v518_v53 = vsel %vm466_vm1, %v1007_v49, 0.0  ;;  %v520_v56 = vsel %vm466_vm1, %v1010_v45, 0.0  ;;  %v522_v58 = vsel %vm466_vm1, %v1014_v52, 0.0 }
 0x314   :  { %v524_v60 = vsel %vm466_vm1, %v1018_v55, 0.0  ;;  %v549_v30 = vsub.f32 0.0, %v504_v39  ;;  %v548_v31 = vsub.f32 0.0, %v503_v36  ;;  %v550_v34 = vsub.f32 0.0, %v505_v40 }
 0x315   :  { %v515_v37 = vadd.f32 %v514_v38, %v513_v47  ;;  %v551_v44 = vsub.f32 0.0, %v1003_v42  ;;  %v553_v40 = vsub.f32 0.0, %v1010_v45 }
 0x317   :  { %v517_v51 = vadd.f32 %v516_v50, %v515_v37  ;;  %v552_v37 = vsub.f32 0.0, %v1007_v49 }
 0x319   :  { %v519_v54 = vadd.f32 %v518_v53, %v517_v51  ;;  %v554_v51 = vsub.f32 0.0, %v1014_v52 }
 0x31b   :  { %v521_v57 = vadd.f32 %v520_v56, %v519_v54 }
 0x31d   :  { %v523_v59 = vadd.f32 %v522_v58, %v521_v57  ;;  %v555_v58 = vsub.f32 0.0, %v1018_v55 }
 0x31f   :  { %v525_v61 = vadd.f32 %v524_v60, %v523_v59 }
 0x321   :  { %526 = vadd.xlane.f32.xlu1 %v525_v61 }
 0x3aa   :  { %v527_v62 = vpop.xlane.xlu1 %526 }
 0x3ab   :  { %v528_v63 = vrot.slane %v527_v62, 4 }
 0x3ad   :  { %v529_v3 = vadd.f32 %v528_v63, %v527_v62 }
 0x3af   :  { %v530_v7 = vrot.slane %v529_v3, 2 }
 0x3b1   :  { %v531_v10 = vadd.f32 %v530_v7, %v529_v3 }
 0x3b3   :  { %v532_v11 = vrot.slane %v531_v10, 1 }
 0x3b5   :  { %v533_v17 = vadd.f32 %v532_v11, %v531_v10 }
 0x3b7   :  { %775 = vpush %v533_v17 }
 0x3e8   :  { %s776_s28 = spop %775 }
 0x3e9   :  { %s537_s29 = smul.f32 0.015873017, %s776_s28 }
 0x3eb   :  { %v538_v22 = vstv %s537_s29  ;;  %s556_s30 = smul.f32 2.0, %s537_s29 }
 0x3ec   :  { %782 = vrsqrt.f32 %v538_v22  ;;  %vm541_vm2 = vcmp.eq.f32.partialorder %v538_v22, inf  ;;  %v544_v25 = vand.u32 2147483648, %v538_v22  ;;  %vm543_vm3 = vcmp.eq.f32.partialorder %v538_v22, 0.0 }
 0x3ed   :  { %v557_v28 = vstv %s556_s30 }
 0x3ee   :  { %784 = vrcp.f32 %v557_v28 }
 0x3f9   :  { %v783_v23 = vpop.eup %782 }
 0x3fa   :  { %v540_v24 = vmul.f32 %v783_v23, %v538_v22 }
 0x3fb   :  { %v785_v29 = vpop.eup %784 }
 0x3fc   :  { %v542_v26 = vsel %vm541_vm2, %v538_v22, %v540_v24  ;;  %v560_v32 = vmul.f32 %v785_v29, %v549_v30  ;;  %v559_v33 = vmul.f32 %v785_v29, %v548_v31  ;;  %v561_v43 = vmul.f32 %v785_v29, %v550_v34 }
 0x3fd   :  { %v545_v27 = vsel %vm543_vm3, %v544_v25, %v542_v26  ;;  %v562_v38 = vmul.f32 %v785_v29, %v551_v44  ;;  %v563_v39 = vmul.f32 %v785_v29, %v552_v37  ;;  %v564_v50 = vmul.f32 %v785_v29, %v553_v40 }
 0x3fe   :  { %777 = vpush %v545_v27  ;;  %v569_v35 = vmul.f32 1.442695, %v560_v32  ;;  %v567_v41 = vmul.f32 1.442695, %v559_v33  ;;  %v571_v48 = vmul.f32 1.442695, %v561_v43  ;;  %v565_v56 = vmul.f32 %v785_v29, %v554_v51 }
 0x3ff   :  { %v573_v36 = vmul.f32 1.442695, %v562_v38  ;;  %v575_v46 = vmul.f32 1.442695, %v563_v39  ;;  %v577_v54 = vmul.f32 1.442695, %v564_v50  ;;  %v566_v45 = vmul.f32 %v785_v29, %v555_v58 }
 0x400   :  { %786 = vpow2.f32 %v569_v35  ;;  %v579_v60 = vmul.f32 1.442695, %v565_v56 }
 0x401   :  { %788 = vpow2.f32 %v567_v41  ;;  %v581_v52 = vmul.f32 1.442695, %v566_v45 }
 0x40d   :  { %v787_v53 = vpop.eup %786 }
 0x40e   :  { %v789_v42 = vpop.eup %788 }
 0x42f   :  { %s778_s6 = spop %777 }
 0x430   :  { %s547_s7 = smul.f32 2.5066283, %s778_s6 }
 0x432   :  { %v583_v47 = vstv %s547_s7 }
 0x433   :  { %790 = vrcp.f32 %v583_v47 }
 0x434   :  { %792 = vpow2.f32 %v571_v48 }
 0x435   :  { %794 = vpow2.f32 %v573_v36 }
 0x436   :  { %796 = vpow2.f32 %v575_v46 }
 0x437   :  { %798 = vpow2.f32 %v577_v54 }
 0x438   :  { %800 = vpow2.f32 %v579_v60 }
 0x439   :  { %802 = vpow2.f32 %v581_v52 }
 0x440   :  { %v791_v57 = vpop.eup %790 }
 0x441   :  { %v586_v59 = vmul.f32 %v791_v57, %v787_v53  ;;  %v585_v49 = vmul.f32 %v791_v57, %v789_v42  ;;  %v793_v61 = vpop.eup %792 }
 0x442   :  { %v587_v62 = vmul.f32 %v793_v61, %v791_v57  ;;  %v795_v63 = vpop.eup %794 }
 0x443   :  { %600 = vperm.xlu1 %781, %v586_v59   ;;  %595 = vperm.xlu0 %780, %v585_v49   ;;  %v588_v3 = vmul.f32 %v795_v63, %v791_v57  ;;  %v797_v7 = vpop.eup %796 }
 0x444   :  { %v589_v10 = vmul.f32 %v797_v7, %v791_v57  ;;  %v799_v55 = vpop.eup %798 }
 0x445   :  { %v590_v11 = vmul.f32 %v799_v55, %v791_v57  ;;  %v801_v16 = vpop.eup %800 }
 0x446   :  { %v591_v17 = vmul.f32 %v801_v16, %v791_v57  ;;  %v803_v22 = vpop.eup %802 }
 0x447   :  { %605 = vperm.xlu1 %781, %v587_v62   ;;  %v592_v23 = vmul.f32 %v803_v22, %v791_v57 }
 0x44b   :  { %610 = vperm.xlu1 %781, %v588_v3  }
 0x44f   :  { %615 = vperm.xlu1 %781, %v589_v10  }
 0x453   :  { %620 = vperm.xlu1 %781, %v590_v11  }
 0x457   :  { %625 = vperm.xlu1 %781, %v591_v17  }
 0x45b   :  { %630 = vperm.xlu1 %781, %v592_v23  }
 0x4be   :  { %v601_v24 = vpop.permute.xlu1 %600  ;;  %v596_v25 = vpop.permute.xlu0 %595 }
 0x4bf   :  { %v635_v26 = vmul.f32 %v601_v24, %v860_v5  ;;  %v636_v27 = vmul.f32 %v601_v24, %v865_v6  ;;  %v633_v28 = vmul.f32 %v596_v25, %v872_v8  ;;  %v634_v29 = vmul.f32 %v596_v25, %v877_v9 }
 0x4c1   :  { %651 = vst [vmem:[%s1100_s5 + $0x10] sm:$0xff] %v635_v26  ;;  %652 = vst [vmem:[%s1100_s5 + $0x18] sm:$0xff] %v636_v27 }
 0x4c2   :  { %649 = vst [vmem:[%s1100_s5] sm:$0xff] %v633_v28  ;;  %650 = vst [vmem:[%s1100_s5 + $0x8] sm:$0xff] %v634_v29  ;;  %v606_v5 = vpop.permute.xlu1 %605 }
 0x4c3   :  { %v637_v6 = vmul.f32 %v606_v5, %v848_v2  ;;  %v638_v8 = vmul.f32 %v606_v5, %v855_v4 }
 0x4c5   :  { %653 = vst [vmem:[%s1100_s5 + $0x20] sm:$0xff] %v637_v6  ;;  %654 = vst [vmem:[%s1100_s5 + $0x28] sm:$0xff] %v638_v8 }
 0x4c6   :  { %v611_v9 = vpop.permute.xlu1 %610 }
 0x4c7   :  { %v639_v30 = vmul.f32 %v611_v9, %v838_v0  ;;  %v640_v31 = vmul.f32 %v611_v9, %v843_v1 }
 0x4c9   :  { %655 = vst [vmem:[%s1100_s5 + $0x30] sm:$0xff] %v639_v30  ;;  %656 = vst [vmem:[%s1100_s5 + $0x38] sm:$0xff] %v640_v31 }
 0x4ca   :  { %v616_v2 = vpop.permute.xlu1 %615 }
 0x4cb   :  { %v641_v4 = vmul.f32 %v616_v2, %v920_v20  ;;  %v642_v32 = vmul.f32 %v616_v2, %v925_v21 }
 0x4cd   :  { %657 = vst [vmem:[%s1100_s5 + $0x40] sm:$0xff] %v641_v4  ;;  %658 = vst [vmem:[%s1100_s5 + $0x48] sm:$0xff] %v642_v32 }
 0x4ce   :  { %v621_v0 = vpop.permute.xlu1 %620 }
 0x4cf   :  { %v643_v1 = vmul.f32 %v621_v0, %v910_v18  ;;  %v644_v33 = vmul.f32 %v621_v0, %v915_v19 }
 0x4d1   :  { %659 = vst [vmem:[%s1100_s5 + $0x50] sm:$0xff] %v643_v1  ;;  %660 = vst [vmem:[%s1100_s5 + $0x58] sm:$0xff] %v644_v33 }
 0x4d2   :  { %v626_v20 = vpop.permute.xlu1 %625 }
 0x4d3   :  { %v645_v21 = vmul.f32 %v626_v20, %v896_v14  ;;  %v646_v34 = vmul.f32 %v626_v20, %v901_v15 }
 0x4d5   :  { %661 = vst [vmem:[%s1100_s5 + $0x60] sm:$0xff] %v645_v21  ;;  %662 = vst [vmem:[%s1100_s5 + $0x68] sm:$0xff] %v646_v34 }
 0x4d6   :  { %v631_v18 = vpop.permute.xlu1 %630 }
 0x4d7   :  { %v647_v19 = vmul.f32 %v631_v18, %v886_v12  ;;  %v648_v35 = vmul.f32 %v631_v18, %v891_v13 }
 0x4d9   :  { %663 = vst [vmem:[%s1100_s5 + $0x70] sm:$0xff] %v647_v19  ;;  %664 = vst [vmem:[%s1100_s5 + $0x78] sm:$0xff] %v648_v35 }

</bundles_post_ra>
